<compile_context>
chip_gen: v7x
topology: tpu7x:2x2x1
jax: 0.10.0
libtpu: 0.0.40
codegen_flags: <defaults>
</compile_context>

<pallas_src>
import jax
import jax.numpy as jnp
from jax.experimental import pallas as pl
from jax.experimental.pallas import tpu as pltpu


def _chroma_pool_kernel(x_ref, pcb_ref, pcr_ref, cb_out, cr_out):
    # x_ref   : (TH, 3*TW)     channel-interleaved image rows
    # pcb_ref : (3*TW, TW//2)  f32, 0.25 at rows 6j+1 and 6j+4 of column j
    # pcr_ref : (3*TW, TW//2)  f32, 0.25 at rows 6j+2 and 6j+5 of column j
    # cb_out, cr_out : (TH//2, TW//2)
    th2 = cb_out.shape[0]

    # Vertical 2x pool: stride-2 sublane loads + one VPU add (f32 accumulate).
    even = x_ref[pl.ds(0, th2, stride=2), :].astype(jnp.float32)
    odd = x_ref[pl.ds(1, th2, stride=2), :].astype(jnp.float32)
    t = even + odd                                      # (TH//2, 3*TW)

    # Horizontal 2x pool + channel de-interleave, one MXU matmul per plane
    # (the 1/4 factor is baked into the matrices).
    cb_out[...] = jnp.dot(
        t, pcb_ref[...], preferred_element_type=jnp.float32).astype(cb_out.dtype)
    cr_out[...] = jnp.dot(
        t, pcr_ref[...], preferred_element_type=jnp.float32).astype(cr_out.dtype)


def _channel_pool_matrix(tw, channel):
    """(3*tw, tw//2) f32 matrix selecting `channel` of every horizontal pixel pair.

    Entry [k, j] = 0.25 iff k == 6*j + channel or k == 6*j + 3 + channel, i.e.
    it picks image[..., 2j, channel] and image[..., 2j+1, channel] out of the
    channel-interleaved row and averages them (the horizontal half of the 2x2
    mean; the vertical half is done on the VPU before the matmul).
    """
    rows = jnp.arange(3 * tw)[:, None]
    cols = jnp.arange(tw // 2)[None, :]
    sel = (rows == 6 * cols + channel) | (rows == 6 * cols + 3 + channel)
    return 0.25 * sel.astype(jnp.float32)


def _choose_tiles(B, H, W, itemsize):
    """Pick (TH, TW) pixel tiles.

    TW: full width when the folded channel-select matrices stay small (keeps
        every input DMA a single contiguous slab and the output lane-dense),
        otherwise 512 (multiple of 256, so all block dims stay (8,128)-legal;
        a ragged last block is handled by the cdiv grid).
    TH: H when it fits the per-buffer budget, otherwise a multiple of 16 so
        both TH and TH//2 stay 8-aligned -- no whole-image fallback that can
        exceed the scoped-VMEM limit (v7x 64 MiB physical, v5e 16 MiB default).
    """
    TW_CAP = 512
    tw = W if W <= TW_CAP else TW_CAP

    per_buffer_bytes = 1536 * 1024        # ~1.5 MiB per pipelined input buffer
    th_cap = max(16, (per_buffer_bytes // (3 * tw * itemsize)) // 16 * 16)
    th = H if H <= th_cap else th_cap

    # Guarantee >= 2 grid steps on batch-1 inputs so v7x's second TensorCore
    # has work and input/output double-buffering stays active.
    if B == 1 and th == H and tw == W and H >= 32:
        half = (H + 1) // 2
        half += (-half) % 16              # round up to a multiple of 16
        if half < H:
            th = half
    return th, tw


def chroma_subsampling(image):
    """image: (B, H, W, 3) float -> (y (B,H,W), cb (B,H/2,W/2), cr (B,H/2,W/2))."""
    B, H, W, C = image.shape
    assert C == 3 and H % 2 == 0 and W % 2 == 0
    dtype = image.dtype
    # Integer images would zero the 0.25 pool weights / overflow the row sum;
    # the PyTorch reference (AvgPool2d) is float-only as well.
    assert jnp.issubdtype(dtype, jnp.floating), (
        "chroma_subsampling expects a floating-point image")

    # Y channel: exact passthrough, never routed through the kernel.
    y = image[..., 0]
    # TODO(synk): fusing the Y slice into the kernel (single HBM read of the
    # image) needs a lane-stride-3 gather; kept as a plain XLA slice for now.

    # Free, contiguous view (no HBM intermediate): (B, H, W, 3) -> (B, H, 3W).
    flat = image.reshape(B, H, 3 * W)

    th, tw = _choose_tiles(B, H, W, dtype.itemsize)
    pcb = _channel_pool_matrix(tw, 1)
    pcr = _channel_pool_matrix(tw, 2)

    grid = (B, pl.cdiv(H, th), pl.cdiv(W, tw))

    cb, cr = pl.pallas_call(
        _chroma_pool_kernel,
        out_shape=(
            jax.ShapeDtypeStruct((B, H // 2, W // 2), dtype),
            jax.ShapeDtypeStruct((B, H // 2, W // 2), dtype),
        ),
        grid=grid,
        in_specs=[
            # One contiguous (th, 3*tw) slab of the interleaved image.
            pl.BlockSpec((None, th, 3 * tw), lambda b, i, j: (b, i, j)),
            # Small channel-select / pool matrices: constant block index, so
            # they stay resident in VMEM across the whole grid.
            pl.BlockSpec((3 * tw, tw // 2), lambda b, i, j: (0, 0)),
            pl.BlockSpec((3 * tw, tw // 2), lambda b, i, j: (0, 0)),
        ],
        out_specs=[
            pl.BlockSpec((None, th // 2, tw // 2), lambda b, i, j: (b, i, j)),
            pl.BlockSpec((None, th // 2, tw // 2), lambda b, i, j: (b, i, j)),
        ],
        compiler_params=pltpu.CompilerParams(
            dimension_semantics=("parallel", "parallel", "parallel")),
    )(flat, pcb, pcr)
    return y, cb, cr


chroma_subsampling_jit = jax.jit(chroma_subsampling)


def _reference(image):
    y = image[:, :, :, 0]

    def pool(x):  # (B, H, W) -> (B, H/2, W/2)
        b, h, w = x.shape
        return x.reshape(b, h // 2, 2, w // 2, 2).mean(axis=(2, 4))

    return y, pool(image[:, :, :, 1]), pool(image[:, :, :, 2])


if __name__ == "__main__":
    key = jax.random.PRNGKey(0)

    # Case 1: small batch-2 image (module's expected layout), single tile.
    B, H, W = 2, 16, 16
    image = jax.random.uniform(key, (B, H, W, 3), dtype=jnp.float32)
    y, cb, cr = chroma_subsampling_jit(image)
    jax.block_until_ready((y, cb, cr))
    y_ref, cb_ref, cr_ref = _reference(image)
    assert y.shape == (B, H, W)
    assert cb.shape == (B, H // 2, W // 2) and cr.shape == (B, H // 2, W // 2)
    assert jnp.allclose(y, y_ref)
    assert jnp.allclose(cb, cb_ref, atol=1e-5)
    assert jnp.allclose(cr, cr_ref, atol=1e-5)

    # Case 2: batch-1 image exercising the multi-block (megacore split) path.
    image2 = jax.random.uniform(jax.random.PRNGKey(0), (1, 64, 32, 3),
                                dtype=jnp.float32)
    y2, cb2, cr2 = chroma_subsampling_jit(image2)
    jax.block_until_ready((y2, cb2, cr2))
    y2_ref, cb2_ref, cr2_ref = _reference(image2)
    assert jnp.allclose(y2, y2_ref)
    assert jnp.allclose(cb2, cb2_ref, atol=1e-5)
    assert jnp.allclose(cr2, cr2_ref, atol=1e-5)

    print("KERNEL_OK")
</pallas_src>

<mosaic_0001>
module attributes {stable_mosaic.version = 11 : i64} {
  func.func @_chroma_pool_kernel(%arg0: i32, %arg1: i32, %arg2: i32, %arg3: memref<1x16x48xf32, #tpu.memory_space<vmem>>, %arg4: memref<48x8xf32, #tpu.memory_space<vmem>>, %arg5: memref<48x8xf32, #tpu.memory_space<vmem>>, %arg6: memref<1x8x8xf32, #tpu.memory_space<vmem>>, %arg7: memref<1x8x8xf32, #tpu.memory_space<vmem>>) attributes {dimension_semantics = [#tpu.dimension_semantics<parallel>, #tpu.dimension_semantics<parallel>, #tpu.dimension_semantics<parallel>], iteration_bounds = array<i64: 2, 1, 1>, scalar_prefetch = 0 : i64, scratch_operands = 0 : i64, tpu.core_type = #tpu.core_type<tc>, window_params = [{transform_indices = @transform_0, window_bounds = array<i64: 1, 16, 48>}, {pipeline_mode = #tpu.pipeline_mode<synchronous>, transform_indices = @transform_1, window_bounds = array<i64: 48, 8>}, {pipeline_mode = #tpu.pipeline_mode<synchronous>, transform_indices = @transform_2, window_bounds = array<i64: 48, 8>}, {transform_indices = @transform_3, window_bounds = array<i64: 1, 8, 8>}, {transform_indices = @transform_4, window_bounds = array<i64: 1, 8, 8>}]} {
    %c0 = arith.constant 0 : index
    %c0_0 = arith.constant 0 : index
    %c0_1 = arith.constant 0 : index
    %0 = tpu.strided_load %arg3[%c0, %c0_0, %c0_1] {strides = array<i32: 1, 2, 1>} : memref<1x16x48xf32, #tpu.memory_space<vmem>>, vector<1x8x48xf32>
    %1 = vector.shape_cast %0 : vector<1x8x48xf32> to vector<8x48xf32>
    %c0_2 = arith.constant 0 : index
    %c1 = arith.constant 1 : index
    %c0_3 = arith.constant 0 : index
    %2 = tpu.strided_load %arg3[%c0_2, %c1, %c0_3] {strides = array<i32: 1, 2, 1>} : memref<1x16x48xf32, #tpu.memory_space<vmem>>, vector<1x8x48xf32>
    %3 = vector.shape_cast %2 : vector<1x8x48xf32> to vector<8x48xf32>
    %4 = arith.addf %1, %3 : vector<8x48xf32>
    %c0_4 = arith.constant 0 : index
    %c0_5 = arith.constant 0 : index
    %5 = vector.load %arg4[%c0_4, %c0_5] : memref<48x8xf32, #tpu.memory_space<vmem>>, vector<48x8xf32>
    %cst = arith.constant dense<0.000000e+00> : vector<8x8xf32>
    %6 = tpu.matmul %4, %5, %cst {dimension_numbers = #tpu.dot_dimension_numbers<[1], [0], [0], [1], [0, 0, 1, 1], [], []>} : vector<8x48xf32>, vector<48x8xf32>, vector<8x8xf32> -> vector<8x8xf32>
    %c0_6 = arith.constant 0 : index
    %c0_7 = arith.constant 0 : index
    %c0_8 = arith.constant 0 : index
    %7 = vector.load %arg6[%c0_6, %c0_7, %c0_8] : memref<1x8x8xf32, #tpu.memory_space<vmem>>, vector<1x8x8xf32>
    %8 = vector.shape_cast %7 : vector<1x8x8xf32> to vector<8x8xf32>
    %9 = vector.shape_cast %6 : vector<8x8xf32> to vector<1x8x8xf32>
    tpu.vector_store %arg6[%c0_6, %c0_7, %c0_8], %9 {strides = array<i32>} : memref<1x8x8xf32, #tpu.memory_space<vmem>>, vector<1x8x8xf32>,
    %c0_9 = arith.constant 0 : index
    %c0_10 = arith.constant 0 : index
    %10 = vector.load %arg5[%c0_9, %c0_10] : memref<48x8xf32, #tpu.memory_space<vmem>>, vector<48x8xf32>
    %cst_11 = arith.constant dense<0.000000e+00> : vector<8x8xf32>
    %11 = tpu.matmul %4, %10, %cst_11 {dimension_numbers = #tpu.dot_dimension_numbers<[1], [0], [0], [1], [0, 0, 1, 1], [], []>} : vector<8x48xf32>, vector<48x8xf32>, vector<8x8xf32> -> vector<8x8xf32>
    %c0_12 = arith.constant 0 : index
    %c0_13 = arith.constant 0 : index
    %c0_14 = arith.constant 0 : index
    %12 = vector.load %arg7[%c0_12, %c0_13, %c0_14] : memref<1x8x8xf32, #tpu.memory_space<vmem>>, vector<1x8x8xf32>
    %13 = vector.shape_cast %12 : vector<1x8x8xf32> to vector<8x8xf32>
    %14 = vector.shape_cast %11 : vector<8x8xf32> to vector<1x8x8xf32>
    tpu.vector_store %arg7[%c0_12, %c0_13, %c0_14], %14 {strides = array<i32>} : memref<1x8x8xf32, #tpu.memory_space<vmem>>, vector<1x8x8xf32>,
    return
  }
  func.func @transform_0(%arg0: i32, %arg1: i32, %arg2: i32) -> (i32, i32, i32) {
    %c0_i32 = arith.constant 0 : i32
    return %arg0, %arg1, %arg2 : i32, i32, i32
  }
  func.func @transform_1(%arg0: i32, %arg1: i32, %arg2: i32) -> (i32, i32) {
    %c0_i32 = arith.constant 0 : i32
    %c0_i32_0 = arith.constant 0 : i32
    %c0_i32_1 = arith.constant 0 : i32
    return %c0_i32, %c0_i32_0 : i32, i32
  }
  func.func @transform_2(%arg0: i32, %arg1: i32, %arg2: i32) -> (i32, i32) {
    %c0_i32 = arith.constant 0 : i32
    %c0_i32_0 = arith.constant 0 : i32
    %c0_i32_1 = arith.constant 0 : i32
    return %c0_i32, %c0_i32_0 : i32, i32
  }
  func.func @transform_3(%arg0: i32, %arg1: i32, %arg2: i32) -> (i32, i32, i32) {
    %c0_i32 = arith.constant 0 : i32
    return %arg0, %arg1, %arg2 : i32, i32, i32
  }
  func.func @transform_4(%arg0: i32, %arg1: i32, %arg2: i32) -> (i32, i32, i32) {
    %c0_i32 = arith.constant 0 : i32
    return %arg0, %arg1, %arg2 : i32, i32, i32
  }
}

</mosaic_0001>

<bundles_post_ra>
// kernel: chroma_subsampling.1
= control target key start
LH: loop header
LB: loop body
LE: loop exit
PB: predicated region body
PF: predicated region fallthrough
CT: control target
= control target key end

     0   :  { %10 = vsyncpa [#allocation3], 0  ;;  %s1042_s0 = inlined_call_operand.vmem [shape: f32[2,16,48], index: 0, kind: input, shape index: {}]   ;;  %s1043_s1 = inlined_call_operand.vmem [shape: f32[48,8], index: 1, kind: input, shape index: {}]   ;;  %s1044_s2 = inlined_call_operand.vmem [shape: f32[48,8], index: 2, kind: input, shape index: {}]   ;;  %s1045_s3 = inlined_call_operand.hbm [shape: f32[2,8,8], index: 3, kind: output, shape index: {0}]   ;;  %s1046_s4 = inlined_call_operand.hbm [shape: f32[2,8,8], index: 4, kind: output, shape index: {1}]  }
   0x1   :  { %12 = vsyncpa [#allocation3 + $0x1], 0 }
   0x2   :  { %13 = vsyncpa [#allocation5], 0 }
   0x3   :  { %15 = vsyncpa [#allocation5 + $0x1], 0  ;;  %s861_s15 = smov 0   ;;  %s863_s16 = smov 0  }
   0x4   :  { %s865_s17 = smov 0   ;;  %s867_s18 = smov 0  }
   0x5   :  { %s869_s19 = smov 0   ;;  %s871_s20 = smov 0  }
   0x6 LB: > { %s575_s21 = sadd.s32 4294967295, %s829_s20   ;;  %s576_s22 = sadd.s32 4294967294, %s829_s20   ;;  %s829_s20 = sphi %s871_s20, %s21_s20   ;;  %s825_s19 = sphi %s869_s19, %s1053_s19   ;;  %s821_s18 = sphi %s867_s18, %s1052_s18   ;;  %s817_s17 = sphi %s865_s17, %s1051_s17   ;;  %s813_s16 = sphi %s863_s16, %s1050_s16   ;;  %s809_s15 = sphi %s861_s15, %s1049_s15  }
   0x7   : > { %s40_s23 = sadd.s32 1, %s825_s19  ;;  %s123_s24 = sadd.s32 1, %s817_s17 }
   0x8   : > { %p42_p0 = scmp.ge.s32.totalorder %s40_s23, 2  ;;  %p133_p1 = scmp.ne.s32.totalorder %s817_s17, %s813_s16 }
   0x9   : > { %p134_p2 = scmp.eq.s32.totalorder %s575_s21, 1  ;;  %p139_p3 = scmp.ne.s32.totalorder %s813_s16, %s809_s15 }
   0xa   : > { %s1055_s23 = smov (%p42_p0, %s40_s23), 0  ;;  %p140_p5 = scmp.eq.s32.totalorder %s576_s22, 1 }
   0xb   : > { %p901_p4 = por %p134_p2, %p133_p1  ;;  %s116_s26 = ssub.s32 %s825_s19, %s1055_s23 }
   0xc   : > { %p579_p6 = scmp.ge.s32.totalorder %s829_s20, 1  ;;  %p121_p7 = scmp.eq.s32.totalorder %s116_s26, 0 }
   0xd   : > { %p908_p8 = por %p140_p5, %p139_p3  ;;  %p210_p9 = scmp.lt.s32.totalorder %s829_s20, 3 }
   0xe   : > { %s914_s28 = scalar_select %p121_p7, %s817_s17, %s123_s24  }
   0xf   : > { %p211_p10 = pnand %p579_p6, %p210_p9 }
  0x10   : > { %v265_v0 = vld [vmem:[%s1043_s1] sm:$0xff] (!%p211_p10)  ;;  %v266_v1 = vld [vmem:[%s1043_s1 + $0x8] sm:$0xff] (!%p211_p10)  ;;  %v831_v3 = vmov (!%p211_p10), 0.0|0.0   ;;  %v267_v6 = vld [vmem:[%s1043_s1 + $0x10] sm:$0xff] (!%p211_p10)  ;;  %p249_p11 = scmp.lt.s32.totalorder (!%p211_p10), %s821_s18, 1  ;;  %vm832_vm0 = vmmov (!%p211_p10), 0  }
  0x11   : > { %214 = sbr.rel (%p211_p10) target bundleno = 280 (0x118), region = 32  ;;  %v347_v2 = vld [vmem:[%s1044_s2] sm:$0xff] (!%p211_p10)  ;;  %638 = vmatprep.subr.bf16.mxu0 (!%p211_p10), %v831_v3  ;;  %647 = vmatprep.subr.bf16.mxu1 (!%p211_p10), %v831_v3  ;;  %v639_v4 = vpack.c.bf16 (!%p211_p10), %v266_v1, %v265_v0  ;;  %v348_v5 = vld [vmem:[%s1044_s2 + $0x8] sm:$0xff] (!%p211_p10)  ;;  %v268_v7 = vld [vmem:[%s1043_s1 + $0x18] sm:$0xff] (!%p211_p10)  ;;  %v833_v11 = vmov (!%p211_p10), 0.0   ;;  %vm271_vm1 = vcmask (!%p211_p10), 392192  }
  0x12   : > { %v648_v8 = vpack.c.bf16 (!%p211_p10), %v348_v5, %v347_v2  ;;  %v349_v9 = vld [vmem:[%s1044_s2 + $0x10] sm:$0xff] (!%p211_p10)  ;;  %v350_v10 = vld [vmem:[%s1044_s2 + $0x18] sm:$0xff] (!%p211_p10)  ;;  %620 = vmatprep.mubr.msk.f32.mxu0 (!%p211_p10), %vm832_vm0, %v833_v11  ;;  %635 = vmatprep.mubr.msk.f32.mxu1 (!%p211_p10), %vm832_vm0, %v833_v11  ;;  %v642_v12 = vpack.c.bf16 (!%p211_p10), %v268_v7, %v267_v6  ;;  %v269_v14 = vld [vmem:[%s1043_s1 + $0x20] sm:$0xff] (!%p211_p10)  ;;  %s958_s22 = sand.u32 (!%p211_p10), 1, %s813_s16   ;;  %s589_s26 = sshll.u32 (!%p211_p10), %s821_s18, 7  ;;  %vm345_vm2 = vcmask (!%p211_p10), 64512  }
  0x13   : > { %640 = vmatpush3.bf16.msra.mxu0 (!%p211_p10), %v639_v4  ;;  %v651_v13 = vpack.c.bf16 (!%p211_p10), %v350_v10, %v349_v9  ;;  %v270_v15 = vld [vmem:[%s1043_s1 + $0x28] sm:$0xff] (!%p211_p10)  ;;  %v351_v16 = vld [vmem:[%s1044_s2 + $0x20] sm:$0xff] (!%p211_p10)  ;;  %s580_s24 = sshll.u32 (!%p211_p10), %s958_s22, 3  ;;  %s965_s9 = scalar_lea.hbm (!%p211_p10), %s1045_s3, %s589_s26 }
  0x14   : > { %649 = vmatpush3.bf16.msra.mxu1 (!%p211_p10), %v648_v8  ;;  %641 = vmatprep.subr.bf16.mxu0 (!%p211_p10), %v831_v3  ;;  %v352_v17 = vld [vmem:[%s1044_s2 + $0x28] sm:$0xff] (!%p211_p10)  ;;  %v645_v18 = vpack.c.bf16 (!%p211_p10), %v270_v15, %v269_v14  ;;  %s247_s5 = scalar_lea.vmem (!%p211_p10), [#allocation4], %s580_s24  ;;  %s834_s14 = smov (!%p211_p10), [#allocation2]  }
  0x15   : > { %650 = vmatprep.subr.bf16.mxu1 (!%p211_p10), %v831_v3  ;;  %v654_v21 = vpack.c.bf16 (!%p211_p10), %v352_v17, %v351_v16  ;;  %s460_s6 = sshll.u32 (!%p211_p10), %s247_s5, 4  ;;  %s974_s6 = int_to_ptr.vmem [resolvable:$true] %s460_s6 }
  0x17   : > { %643 = vmatpush3.bf16.msra.mxu0 (!%p211_p10), %v642_v12 }
  0x18   : > { %s250_s29 = scalar_select %p249_p11, %s821_s18, 1  ;;  %652 = vmatpush3.bf16.msra.mxu1 %v651_v13  ;;  %644 = vmatprep.subr.bf16.mxu0 %v831_v3 }
  0x19   : > { %653 = vmatprep.subr.bf16.mxu1 %v831_v3  ;;  %s972_s18 = scalar_lea.hbm %s1046_s4, %s589_s26 }
  0x1a   : > { %s593_s12 = sshll.u32 %s250_s29, 4  ;;  %s240_s29 = scalar_lea.vmem [#allocation2], %s580_s24 }
  0x1b   : > { %s259_s21 = scalar_lea.vmem %s1042_s0, %s593_s12  ;;  %646 = vmatpush3.bf16.msra.mxu0 %v645_v18  ;;  %s445_s30 = sshll.u32 %s240_s29, 4  ;;  %s967_s30 = int_to_ptr.vmem [resolvable:$true] %s445_s30 }
  0x1c   : > { %v261_v19 = vld [vmem:[%s259_s21] ss:$2 sm:$0xff]  ;;  %v584_v20 = vld [vmem:[%s259_s21 + $0x1] ss:$2 sm:$0xff]  ;;  %655 = vmatpush3.bf16.msra.mxu1 %v654_v21  ;;  %s425_s12 = scalar_lea.sflag [#allocation3], %s958_s22  ;;  %s719_s13 = scalar_lea.vmem %s967_s30, 128 }
  0x1d   : > { %v264_v22 = vadd.f32 %v584_v20, %v261_v19  ;;  %p720_p12 = scmp.ne.s32.totalorder %s967_s30, %s719_s13  ;;  %s723_s21 = sshll.u32 %s834_s14, 4  ;;  %s724_s21 = int_to_ptr.vmem [resolvable:$false] %s723_s21 }
  0x1e   : > { %s725_s24 = scalar_lea.vmem %s724_s21, 256  ;;  %p726_p1 = scmp.lt.s32.totalorder %s967_s30, %s724_s21 }
  0x1f   : > { %621 = vmatmul.mubr.msk.f32.vlgmr.msra.gmra.mrb[0].mxu0 %vm271_vm1, %v264_v22  ;;  %636 = vmatmul.mubr.msk.f32.vlgmr.msra.gmra.mrb[0].mxu1 %vm271_vm1, %v264_v22  ;;  %p721_p13 = pnand %p720_p12, %p901_p4  ;;  %p727_p2 = scmp.lt.s32.totalorder %s725_s24, %s719_s13 }
  0x21   : > { %p722_p0 = pneg %p721_p13  ;;  %p728_p3 = por %p727_p2, %p726_p1 }
  0x23   : > { %p729_p5 = pnand %p728_p3, %p722_p0 }
  0xf2   : > { %v341_v23 = vpop.f32.mrb[0].mxu0  ;;  %v419_v24 = vpop.f32.mrb[0].mxu1 }
  0xf3   : > { %346 = vst.msk [vmem:[%s240_s29] sm:$0xff] %vm345_vm2, %v341_v23  ;;  %v622_v25 = vpop.f32.mrb[1].mxu0  ;;  %423 = vst.msk [vmem:[%s247_s5] sm:$0xff] %vm345_vm2, %v419_v24  ;;  %v637_v26 = vpop.f32.mrb[1].mxu1 }
  0xf4   : > { %732 = shalt.err (!%p729_p5)
}
  0xf5   : > { %s733_s26 = scalar_lea.hbm %s965_s9, 128  ;;  %s737_s7 = scalar_lea.hbm %s1045_s3, 256 }
  0xf6   : > { %p734_p6 = scmp.ne.s32.totalorder %s965_s9, %s733_s26  ;;  %p738_p10 = scmp.lt.u32.totalorder %s965_s9, %s1045_s3 }
  0xf7   : > { %p739_p11 = scmp.lt.u32.totalorder %s737_s7, %s733_s26  ;;  %p741_p13 = scmp.lt.u32.totalorder %s733_s26, %s965_s9 }
  0xf8   : > { %p735_p7 = pnand %p734_p6, %p901_p4 }
  0xf9   : > { %p740_p12 = por %p739_p11, %p738_p10 }
  0xfa   : > { %p736_p9 = pneg %p735_p7 }
  0xfb   : > { %p742_p0 = por %p741_p13, %p740_p12 }
  0xfd   : > { %p743_p1 = pnand %p742_p0, %p736_p9 }
  0xff   : > { %746 = shalt.err (!%p743_p1)
}
 0x100   : > { %656 = dma.vmem_to_hbm [thread:$0]  (%p901_p4), %s967_s30, 128, %s965_s9, %s425_s12  }
 0x101   : > { %s430_s11 = scalar_lea.sflag [#allocation5], %s958_s22  ;;  %s747_s13 = scalar_lea.vmem %s974_s6, 128 }
 0x102   : > { %p748_p2 = scmp.ne.s32.totalorder %s974_s6, %s747_s13  ;;  %s835_s14 = smov [#allocation4]  }
 0x103   : > { %s751_s21 = sshll.u32 %s835_s14, 4  ;;  %s752_s21 = int_to_ptr.vmem [resolvable:$false] %s751_s21 }
 0x104   : > { %p749_p3 = pnand %p748_p2, %p901_p4  ;;  %s753_s24 = scalar_lea.vmem %s752_s21, 256 }
 0x105   : > { %p754_p6 = scmp.lt.s32.totalorder %s974_s6, %s752_s21  ;;  %p755_p7 = scmp.lt.s32.totalorder %s753_s24, %s747_s13 }
 0x106   : > { %p750_p5 = pneg %p749_p3 }
 0x107   : > { %p756_p9 = por %p755_p7, %p754_p6 }
 0x109   : > { %p757_p10 = pnand %p756_p9, %p750_p5 }
 0x10b   : > { %760 = shalt.err (!%p757_p10)
}
 0x10c   : > { %s761_s22 = scalar_lea.hbm %s972_s18, 128  ;;  %s765_s12 = scalar_lea.hbm %s1046_s4, 256 }
 0x10d   : > { %p762_p11 = scmp.ne.s32.totalorder %s972_s18, %s761_s22  ;;  %p766_p0 = scmp.lt.u32.totalorder %s972_s18, %s1046_s4 }
 0x10e   : > { %p767_p1 = scmp.lt.u32.totalorder %s765_s12, %s761_s22  ;;  %p769_p3 = scmp.lt.u32.totalorder %s761_s22, %s972_s18 }
 0x10f   : > { %p763_p12 = pnand %p762_p11, %p901_p4 }
 0x110   : > { %p768_p2 = por %p767_p1, %p766_p0 }
 0x111   : > { %p764_p13 = pneg %p763_p12 }
 0x112   : > { %p770_p5 = por %p769_p3, %p768_p2 }
 0x114   : > { %p771_p6 = pnand %p770_p5, %p764_p13 }
 0x116   : > { %774 = shalt.err (!%p771_p6)
}
 0x117   : > { %657 = dma.vmem_to_hbm [thread:$0]  (%p901_p4), %s974_s6, 128, %s972_s18, %s430_s11  }
 0x118 PF: > { %p667_p7 = scmp.ge.s32.totalorder %s829_s20, 2  ;;  %s472_s5 = sand.u32 1, %s809_s15  }
 0x119   : > { %s473_s7 = scalar_lea.sflag [#allocation3], %s472_s5 }
 0x11a   : > { %p661_p9 = pnand %p667_p7, %p908_p8 }
 0x11c   : > { %800 = dma.done.wait (!%p661_p9), %s473_s7, 128  }
 0x11d   : > { %802 = vsyncadd (!%p661_p9), %s473_s7, 4294967168  ;;  %s482_s8 = scalar_lea.sflag [#allocation5], %s472_s5 }
 0x11e   : > { %804 = dma.done.wait (!%p661_p9), %s482_s8, 128  }
 0x11f   : > { %806 = vsyncadd (!%p661_p9), %s482_s8, 4294967168  ;;  %s21_s20 = sadd.s32 1, %s829_s20   ;;  %s1049_s15 = smov %s813_s16 }
 0x120   : > { %p18_p10 = scmp.ge.s32.totalorder %s21_s20, 4   ;;  %s1050_s16 = smov %s817_s17 }
 0x121   : > { %s1051_s17 = smov %s914_s28  ;;  %s1052_s18 = smov %s825_s19 }
 0x122   : > { %s1053_s19 = smov %s1055_s23  ;;  %20 = sbr.rel (!%p18_p10) target bundleno = 6 (0x6), region = 85 }
 0x129   :  { %487 = vsyncpa [#allocation3], 1 }
 0x12a   :  { %489 = vsyncpa [#allocation3 + $0x1], 1 }
 0x12b   :  { %490 = vsyncpa [#allocation5], 1 }
 0x12c   :  { %492 = vsyncpa [#allocation5 + $0x1], 1 }

</bundles_post_ra>
